<compile_context>
chip_gen: v6e
topology: v6e:2x2x1
jax: 0.10.0
libtpu: 0.0.40
codegen_flags: <defaults>
</compile_context>

<pallas_src>
import jax
import jax.numpy as jnp
from jax.experimental import pallas as pl
from jax.experimental.pallas import tpu as pltpu


def _round_up(n, m):
    return ((n + m - 1) // m) * m


# --------------------------------------------------------------------------
# Kernel: one grid step processes TB batch elements.
# --------------------------------------------------------------------------
def _buttomup_kernel(feats_ref, segm_ref, queries_ref, adj_ref, wmask_ref,
                     wv_ref, bv_ref, wq_ref, bq_ref, wg_ref, bg_ref,
                     wf_ref, bf_ref, wp_ref, bp_ref,
                     fused_ref, scores_ref):
    TB, seg, F = feats_ref.shape
    _, L, W = queries_ref.shape
    H = wv_ref.shape[1]
    A = wp_ref.shape[1]

    segm = segm_ref[...].reshape(TB * seg, 1)        # f32 masks
    wmask = wmask_ref[...].reshape(TB * L, 1)

    # ---- video encoder: Linear + ReLU, masked by segmasks -----------------
    feats = feats_ref[...].reshape(TB * seg, F)      # bf16
    v = jnp.dot(feats, wv_ref[...], preferred_element_type=jnp.float32)
    v = jnp.maximum(v + bv_ref[...], 0.0) * segm     # (TB*seg, H) f32

    # ---- query encoder: word projection + graph conv over adjmats ---------
    q_in = queries_ref[...].reshape(TB * L, W)       # bf16
    q = jnp.dot(q_in, wq_ref[...], preferred_element_type=jnp.float32)
    q = jnp.maximum(q + bq_ref[...], 0.0) * wmask    # (TB*L, H) f32
    # message passing: batched (L,L) @ (L,H) per batch element
    g = jnp.einsum('bij,bjh->bih', adj_ref[...],
                   q.astype(adj_ref.dtype).reshape(TB, L, H),
                   preferred_element_type=jnp.float32)
    g = jnp.dot(g.reshape(TB * L, H).astype(wg_ref.dtype), wg_ref[...],
                preferred_element_type=jnp.float32)
    g = jnp.maximum(g + bg_ref[...], 0.0) * wmask    # (TB*L, H) f32
    # masked mean pool over words -> (TB, 1, H)
    denom = jnp.maximum(jnp.sum(wmask_ref[...], axis=1, keepdims=True), 1.0)
    q_pool = jnp.sum(g.reshape(TB, L, H), axis=1, keepdims=True)
    q_pool = q_pool * pl.reciprocal(denom, approx=True)

    # ---- multimodal encoder: gated fusion of video & pooled query ---------
    fused_in = (v.reshape(TB, seg, H) * q_pool).reshape(TB * seg, H)
    fused = jnp.dot(fused_in.astype(wf_ref.dtype), wf_ref[...],
                    preferred_element_type=jnp.float32)
    fused = jnp.maximum(fused + bf_ref[...], 0.0) * segm   # (TB*seg, H)
    fused_ref[...] = fused.reshape(TB, seg, H).astype(fused_ref.dtype)

    # ---- prediction head: per-segment anchor scores (lane-dense A) --------
    logits = jnp.dot(fused.astype(wp_ref.dtype), wp_ref[...],
                     preferred_element_type=jnp.float32) + bp_ref[...]
    scores = jax.nn.sigmoid(logits) * segm
    scores_ref[...] = scores.reshape(TB, seg, A).astype(scores_ref.dtype)


# --------------------------------------------------------------------------
# Batch-tile planning (VMEM-aware, even parallel grid for v7x megacore).
# --------------------------------------------------------------------------
def _per_step_vmem_bytes(tb, seg, L, F, W, H, A):
    io = tb * (seg * F + L * W + L * L) * 2            # bf16 per-step inputs
    io += tb * (seg + L) * 4                           # f32 masks
    io += tb * seg * (H + A) * 4                       # f32 per-step outputs
    weights = (F * H + W * H + 2 * H * H + H * A) * 2 + (4 * H + A) * 4
    acts = tb * (3 * seg * H + 3 * L * H + seg * A) * 4  # kernel temporaries
    return 2 * (io + weights) + acts                   # x2: double buffering


def _plan_batch_tiling(B, seg, L, F, W, H, A,
                       rows_target=256, vmem_budget=20 * 1024 * 1024):
    # Target TB*seg >= 256 rows per MXU pass (>=128 already saturates v5e).
    tb = max(1, rows_target // seg)
    while tb > 1 and _per_step_vmem_bytes(tb, seg, L, F, W, H, A) > vmem_budget:
        tb //= 2
    if B < 2 * tb:
        # Small batch: split into two (even) steps instead of padding heavily.
        tb = max(1, (B + 1) // 2)
    steps = -(-B // tb)
    if steps < 2:
        steps = 2
    elif steps % 2:
        steps += 1   # even step count -> balanced split across v7x's 2 TCs
    return tb, steps * tb


# --------------------------------------------------------------------------
# Wrapper
# --------------------------------------------------------------------------
def generalized_buttomup(feats, segmasks, queries, adjmats, wordmasks, params):
    """Returns (fused_feats [B, seg, H], scores1d [B, seg * num_anchors])."""
    B, seg, F = feats.shape
    _, L, W = queries.shape
    H = params["wv"].shape[1]
    A = params["wp"].shape[1]

    # Lane/sublane-dense padded sizes (zero padding is numerically inert:
    # padded rows are masked out, padded weight rows/cols are zero).
    Fp, Wp, Hp, Ap = (_round_up(d, 128) for d in (F, W, H, A))
    segp, Lp = _round_up(seg, 8), _round_up(L, 8)
    TB, Bp = _plan_batch_tiling(B, segp, Lp, Fp, Wp, Hp, Ap)

    def pad3(x, d1, d2, dtype):
        out = jnp.zeros((Bp, d1, d2), dtype)
        return out.at[:B, :x.shape[1], :x.shape[2]].set(x.astype(dtype))

    def pad_w(w, d0, d1, dtype):
        out = jnp.zeros((d0, d1), dtype)
        return out.at[:w.shape[0], :w.shape[1]].set(w.astype(dtype))

    feats_p = pad3(feats, segp, Fp, jnp.bfloat16)
    queries_p = pad3(queries, Lp, Wp, jnp.bfloat16)
    adj_p = pad3(adjmats, Lp, Lp, jnp.bfloat16)
    segm_p = pad3(segmasks.astype(jnp.float32)[..., None], segp, 1, jnp.float32)
    wmask_p = pad3(wordmasks.astype(jnp.float32)[..., None], Lp, 1, jnp.float32)

    wv = pad_w(params["wv"], Fp, Hp, jnp.bfloat16)
    bv = pad_w(params["bv"], 1, Hp, jnp.float32)
    wq = pad_w(params["wq"], Wp, Hp, jnp.bfloat16)
    bq = pad_w(params["bq"], 1, Hp, jnp.float32)
    wg = pad_w(params["wg"], Hp, Hp, jnp.bfloat16)
    bg = pad_w(params["bg"], 1, Hp, jnp.float32)
    wf = pad_w(params["wf"], Hp, Hp, jnp.bfloat16)
    bf = pad_w(params["bf"], 1, Hp, jnp.float32)
    wp = pad_w(params["wp"], Hp, Ap, jnp.bfloat16)
    bp = pad_w(params["bp"], 1, Ap, jnp.float32)

    def per_b(d1, d2):
        return pl.BlockSpec((TB, d1, d2), lambda b: (b, 0, 0))

    def full_w(arr):
        return pl.BlockSpec(arr.shape, lambda b: (0, 0))

    fused, scores = pl.pallas_call(
        _buttomup_kernel,
        out_shape=(jax.ShapeDtypeStruct((Bp, segp, Hp), jnp.float32),
                   jax.ShapeDtypeStruct((Bp, segp, Ap), jnp.float32)),
        grid_spec=pltpu.PrefetchScalarGridSpec(
            num_scalar_prefetch=0,
            grid=(Bp // TB,),
            in_specs=[
                per_b(segp, Fp),     # feats
                per_b(segp, 1),      # segmasks
                per_b(Lp, Wp),       # queries
                per_b(Lp, Lp),       # adjmats
                per_b(Lp, 1),        # wordmasks
                full_w(wv), full_w(bv), full_w(wq), full_w(bq),
                full_w(wg), full_w(bg), full_w(wf), full_w(bf),
                full_w(wp), full_w(bp),
            ],
            out_specs=[per_b(segp, Hp), per_b(segp, Ap)],
        ),
        compiler_params=pltpu.CompilerParams(
            dimension_semantics=("parallel",),
            vmem_limit_bytes=48 * 1024 * 1024),
    )(feats_p, segm_p, queries_p, adj_p, wmask_p,
      wv, bv, wq, bq, wg, bg, wf, bf, wp, bp)

    fused = fused[:B, :seg, :H]
    scores1d = scores[:B, :seg, :A].reshape(B, seg * A)
    return fused, scores1d


# --------------------------------------------------------------------------
# Pure-JAX reference (f32) for correctness checking.
# --------------------------------------------------------------------------
def _reference(feats, segmasks, queries, adjmats, wordmasks, params):
    segm = segmasks.astype(jnp.float32)[..., None]
    wmask = wordmasks.astype(jnp.float32)[..., None]
    v = jax.nn.relu(feats @ params["wv"] + params["bv"]) * segm
    q = jax.nn.relu(queries @ params["wq"] + params["bq"]) * wmask
    g = jnp.einsum('bij,bjh->bih', adjmats, q)
    g = jax.nn.relu(g @ params["wg"] + params["bg"]) * wmask
    denom = jnp.maximum(jnp.sum(wmask, axis=1, keepdims=True), 1.0)
    q_pool = jnp.sum(g, axis=1, keepdims=True) / denom
    fused = jax.nn.relu((v * q_pool) @ params["wf"] + params["bf"]) * segm
    scores = jax.nn.sigmoid(fused @ params["wp"] + params["bp"]) * segm
    B = feats.shape[0]
    return fused, scores.reshape(B, -1)


def init_params(key, feat_dim, w2v_dim, hidden, num_anchors):
    ks = jax.random.split(key, 5)
    scale = 0.05
    return {
        "wv": scale * jax.random.normal(ks[0], (feat_dim, hidden), jnp.float32),
        "bv": jnp.zeros((1, hidden), jnp.float32),
        "wq": scale * jax.random.normal(ks[1], (w2v_dim, hidden), jnp.float32),
        "bq": jnp.zeros((1, hidden), jnp.float32),
        "wg": scale * jax.random.normal(ks[2], (hidden, hidden), jnp.float32),
        "bg": jnp.zeros((1, hidden), jnp.float32),
        "wf": scale * jax.random.normal(ks[3], (hidden, hidden), jnp.float32),
        "bf": jnp.zeros((1, hidden), jnp.float32),
        "wp": scale * jax.random.normal(ks[4], (hidden, num_anchors), jnp.float32),
        "bp": jnp.zeros((1, num_anchors), jnp.float32),
    }


if __name__ == "__main__":
    B, seg, feat_dim = 2, 8, 32
    maxL, w2v_dim = 8, 32
    hidden, num_anchors = 32, 4

    key = jax.random.PRNGKey(0)
    k_feat, k_query, k_adj, k_param = jax.random.split(key, 4)

    feats = jax.random.normal(k_feat, (B, seg, feat_dim), jnp.float32)
    queries = jax.random.normal(k_query, (B, maxL, w2v_dim), jnp.float32)
    adjmats = (jax.random.uniform(k_adj, (B, maxL, maxL)) > 0.5).astype(jnp.float32)
    # deterministic masks: first batch partially/fully valid patterns
    segmasks = jnp.stack([jnp.ones((seg,)),
                          (jnp.arange(seg) < 6).astype(jnp.float32)])
    wordmasks = jnp.stack([(jnp.arange(maxL) < 5).astype(jnp.float32),
                           jnp.ones((maxL,))])

    params = init_params(k_param, feat_dim, w2v_dim, hidden, num_anchors)

    fused, scores1d = generalized_buttomup(
        feats, segmasks, queries, adjmats, wordmasks, params)
    jax.block_until_ready((fused, scores1d))

    assert fused.shape == (B, seg, hidden)
    assert scores1d.shape == (B, seg * num_anchors)

    ref_fused, ref_scores = _reference(
        feats, segmasks, queries, adjmats, wordmasks, params)
    err_f = float(jnp.max(jnp.abs(fused - ref_fused)))
    err_s = float(jnp.max(jnp.abs(scores1d - ref_scores)))
    assert err_f < 5e-2 and err_s < 5e-2, (err_f, err_s)

    print("KERNEL_OK")
</pallas_src>

<mosaic_0001>
module attributes {stable_mosaic.version = 11 : i64} {
  func.func @_buttomup_kernel(%arg0: i32, %arg1: memref<1x8x128xbf16, #tpu.memory_space<vmem>>, %arg2: memref<1x8x1xf32, #tpu.memory_space<vmem>>, %arg3: memref<1x8x128xbf16, #tpu.memory_space<vmem>>, %arg4: memref<1x8x8xbf16, #tpu.memory_space<vmem>>, %arg5: memref<1x8x1xf32, #tpu.memory_space<vmem>>, %arg6: memref<128x128xbf16, #tpu.memory_space<vmem>>, %arg7: memref<1x128xf32, #tpu.memory_space<vmem>>, %arg8: memref<128x128xbf16, #tpu.memory_space<vmem>>, %arg9: memref<1x128xf32, #tpu.memory_space<vmem>>, %arg10: memref<128x128xbf16, #tpu.memory_space<vmem>>, %arg11: memref<1x128xf32, #tpu.memory_space<vmem>>, %arg12: memref<128x128xbf16, #tpu.memory_space<vmem>>, %arg13: memref<1x128xf32, #tpu.memory_space<vmem>>, %arg14: memref<128x128xbf16, #tpu.memory_space<vmem>>, %arg15: memref<1x128xf32, #tpu.memory_space<vmem>>, %arg16: memref<1x8x128xf32, #tpu.memory_space<vmem>>, %arg17: memref<1x8x128xf32, #tpu.memory_space<vmem>>) attributes {dimension_semantics = [#tpu.dimension_semantics<parallel>], iteration_bounds = array<i64: 2>, scalar_prefetch = 0 : i64, scratch_operands = 0 : i64, tpu.core_type = #tpu.core_type<tc>, window_params = [{transform_indices = @transform_0, window_bounds = array<i64: 1, 8, 128>}, {transform_indices = @transform_1, window_bounds = array<i64: 1, 8, 1>}, {transform_indices = @transform_2, window_bounds = array<i64: 1, 8, 128>}, {transform_indices = @transform_3, window_bounds = array<i64: 1, 8, 8>}, {transform_indices = @transform_4, window_bounds = array<i64: 1, 8, 1>}, {pipeline_mode = #tpu.pipeline_mode<synchronous>, transform_indices = @transform_5, window_bounds = array<i64: 128, 128>}, {pipeline_mode = #tpu.pipeline_mode<synchronous>, transform_indices = @transform_6, window_bounds = array<i64: 1, 128>}, {pipeline_mode = #tpu.pipeline_mode<synchronous>, transform_indices = @transform_7, window_bounds = array<i64: 128, 128>}, {pipeline_mode = #tpu.pipeline_mode<synchronous>, transform_indices = @transform_8, window_bounds = array<i64: 1, 128>}, {pipeline_mode = #tpu.pipeline_mode<synchronous>, transform_indices = @transform_9, window_bounds = array<i64: 128, 128>}, {pipeline_mode = #tpu.pipeline_mode<synchronous>, transform_indices = @transform_10, window_bounds = array<i64: 1, 128>}, {pipeline_mode = #tpu.pipeline_mode<synchronous>, transform_indices = @transform_11, window_bounds = array<i64: 128, 128>}, {pipeline_mode = #tpu.pipeline_mode<synchronous>, transform_indices = @transform_12, window_bounds = array<i64: 1, 128>}, {pipeline_mode = #tpu.pipeline_mode<synchronous>, transform_indices = @transform_13, window_bounds = array<i64: 128, 128>}, {pipeline_mode = #tpu.pipeline_mode<synchronous>, transform_indices = @transform_14, window_bounds = array<i64: 1, 128>}, {transform_indices = @transform_15, window_bounds = array<i64: 1, 8, 128>}, {transform_indices = @transform_16, window_bounds = array<i64: 1, 8, 128>}]} {
    %c0 = arith.constant 0 : index
    %c0_0 = arith.constant 0 : index
    %c0_1 = arith.constant 0 : index
    %0 = vector.load %arg2[%c0, %c0_0, %c0_1] : memref<1x8x1xf32, #tpu.memory_space<vmem>>, vector<1x8x1xf32>
    %1 = vector.shape_cast %0 : vector<1x8x1xf32> to vector<8x1xf32>
    %c0_2 = arith.constant 0 : index
    %c0_3 = arith.constant 0 : index
    %c0_4 = arith.constant 0 : index
    %2 = vector.load %arg5[%c0_2, %c0_3, %c0_4] : memref<1x8x1xf32, #tpu.memory_space<vmem>>, vector<1x8x1xf32>
    %3 = vector.shape_cast %2 : vector<1x8x1xf32> to vector<8x1xf32>
    %c0_5 = arith.constant 0 : index
    %c0_6 = arith.constant 0 : index
    %c0_7 = arith.constant 0 : index
    %4 = vector.load %arg1[%c0_5, %c0_6, %c0_7] : memref<1x8x128xbf16, #tpu.memory_space<vmem>>, vector<1x8x128xbf16>
    %5 = vector.shape_cast %4 : vector<1x8x128xbf16> to vector<8x128xbf16>
    %c0_8 = arith.constant 0 : index
    %c0_9 = arith.constant 0 : index
    %6 = vector.load %arg6[%c0_8, %c0_9] : memref<128x128xbf16, #tpu.memory_space<vmem>>, vector<128x128xbf16>
    %cst = arith.constant dense<0.000000e+00> : vector<8x128xf32>
    %7 = tpu.matmul %5, %6, %cst {dimension_numbers = #tpu.dot_dimension_numbers<[1], [0], [0], [1], [0, 0, 1, 1], [], []>} : vector<8x128xbf16>, vector<128x128xbf16>, vector<8x128xf32> -> vector<8x128xf32>
    %c0_10 = arith.constant 0 : index
    %c0_11 = arith.constant 0 : index
    %8 = vector.load %arg7[%c0_10, %c0_11] : memref<1x128xf32, #tpu.memory_space<vmem>>, vector<1x128xf32>
    %9 = vector.broadcast %8 : vector<1x128xf32> to vector<8x128xf32>
    %10 = arith.addf %7, %9 : vector<8x128xf32>
    %cst_12 = arith.constant 0.000000e+00 : f32
    %11 = vector.broadcast %cst_12 : f32 to vector<8x128xf32>
    %12 = arith.maximumf %10, %11 : vector<8x128xf32>
    %13 = vector.broadcast %1 : vector<8x1xf32> to vector<8x128xf32>
    %14 = arith.mulf %12, %13 : vector<8x128xf32>
    %c0_13 = arith.constant 0 : index
    %c0_14 = arith.constant 0 : index
    %c0_15 = arith.constant 0 : index
    %15 = vector.load %arg3[%c0_13, %c0_14, %c0_15] : memref<1x8x128xbf16, #tpu.memory_space<vmem>>, vector<1x8x128xbf16>
    %16 = vector.shape_cast %15 : vector<1x8x128xbf16> to vector<8x128xbf16>
    %c0_16 = arith.constant 0 : index
    %c0_17 = arith.constant 0 : index
    %17 = vector.load %arg8[%c0_16, %c0_17] : memref<128x128xbf16, #tpu.memory_space<vmem>>, vector<128x128xbf16>
    %cst_18 = arith.constant dense<0.000000e+00> : vector<8x128xf32>
    %18 = tpu.matmul %16, %17, %cst_18 {dimension_numbers = #tpu.dot_dimension_numbers<[1], [0], [0], [1], [0, 0, 1, 1], [], []>} : vector<8x128xbf16>, vector<128x128xbf16>, vector<8x128xf32> -> vector<8x128xf32>
    %c0_19 = arith.constant 0 : index
    %c0_20 = arith.constant 0 : index
    %19 = vector.load %arg9[%c0_19, %c0_20] : memref<1x128xf32, #tpu.memory_space<vmem>>, vector<1x128xf32>
    %20 = vector.broadcast %19 : vector<1x128xf32> to vector<8x128xf32>
    %21 = arith.addf %18, %20 : vector<8x128xf32>
    %cst_21 = arith.constant 0.000000e+00 : f32
    %22 = vector.broadcast %cst_21 : f32 to vector<8x128xf32>
    %23 = arith.maximumf %21, %22 : vector<8x128xf32>
    %24 = vector.broadcast %3 : vector<8x1xf32> to vector<8x128xf32>
    %25 = arith.mulf %23, %24 : vector<8x128xf32>
    %c0_22 = arith.constant 0 : index
    %c0_23 = arith.constant 0 : index
    %c0_24 = arith.constant 0 : index
    %26 = vector.load %arg4[%c0_22, %c0_23, %c0_24] : memref<1x8x8xbf16, #tpu.memory_space<vmem>>, vector<1x8x8xbf16>
    %27 = arith.truncf %25 : vector<8x128xf32> to vector<8x128xbf16>
    %28 = vector.shape_cast %27 : vector<8x128xbf16> to vector<1x8x128xbf16>
    "tpu.trace_start"() <{level = 10 : i32, message = "bij,bjh->bih"}> : () -> ()
    %cst_25 = arith.constant dense<0.000000e+00> : vector<1x8x128xf32>
    %29 = tpu.matmul %26, %28, %cst_25 {dimension_numbers = #tpu.dot_dimension_numbers<[2], [1], [1], [2], [0, 0, 0, 1, 1, 2], [0], [0]>} : vector<1x8x8xbf16>, vector<1x8x128xbf16>, vector<1x8x128xf32> -> vector<1x8x128xf32>
    "tpu.trace_stop"() : () -> ()
    %30 = vector.shape_cast %29 : vector<1x8x128xf32> to vector<8x128xf32>
    %31 = arith.truncf %30 : vector<8x128xf32> to vector<8x128xbf16>
    %c0_26 = arith.constant 0 : index
    %c0_27 = arith.constant 0 : index
    %32 = vector.load %arg10[%c0_26, %c0_27] : memref<128x128xbf16, #tpu.memory_space<vmem>>, vector<128x128xbf16>
    %cst_28 = arith.constant dense<0.000000e+00> : vector<8x128xf32>
    %33 = tpu.matmul %31, %32, %cst_28 {dimension_numbers = #tpu.dot_dimension_numbers<[1], [0], [0], [1], [0, 0, 1, 1], [], []>} : vector<8x128xbf16>, vector<128x128xbf16>, vector<8x128xf32> -> vector<8x128xf32>
    %c0_29 = arith.constant 0 : index
    %c0_30 = arith.constant 0 : index
    %34 = vector.load %arg11[%c0_29, %c0_30] : memref<1x128xf32, #tpu.memory_space<vmem>>, vector<1x128xf32>
    %35 = vector.broadcast %34 : vector<1x128xf32> to vector<8x128xf32>
    %36 = arith.addf %33, %35 : vector<8x128xf32>
    %cst_31 = arith.constant 0.000000e+00 : f32
    %37 = vector.broadcast %cst_31 : f32 to vector<8x128xf32>
    %38 = arith.maximumf %36, %37 : vector<8x128xf32>
    %39 = vector.broadcast %3 : vector<8x1xf32> to vector<8x128xf32>
    %40 = arith.mulf %38, %39 : vector<8x128xf32>
    %c0_32 = arith.constant 0 : index
    %c0_33 = arith.constant 0 : index
    %c0_34 = arith.constant 0 : index
    %41 = vector.load %arg5[%c0_32, %c0_33, %c0_34] : memref<1x8x1xf32, #tpu.memory_space<vmem>>, vector<1x8x1xf32>
    %cst_35 = arith.constant dense<0.000000e+00> : vector<1x1xf32>
    %42 = vector.multi_reduction <add>, %41, %cst_35 [1] : vector<1x8x1xf32> to vector<1x1xf32>
    %43 = vector.shape_cast %42 : vector<1x1xf32> to vector<1x1x1xf32>
    %cst_36 = arith.constant 1.000000e+00 : f32
    %44 = vector.broadcast %cst_36 : f32 to vector<1x1x1xf32>
    %45 = arith.maximumf %43, %44 : vector<1x1x1xf32>
    %46 = vector.shape_cast %40 : vector<8x128xf32> to vector<1x8x128xf32>
    %cst_37 = arith.constant dense<0.000000e+00> : vector<1x128xf32>
    %47 = vector.multi_reduction <add>, %46, %cst_37 [1] : vector<1x8x128xf32> to vector<1x128xf32>
    %48 = vector.shape_cast %47 : vector<1x128xf32> to vector<1x1x128xf32>
    %49 = tpu.reciprocal %45 {approx = true} : vector<1x1x1xf32> -> vector<1x1x1xf32>
    %50 = vector.broadcast %49 : vector<1x1x1xf32> to vector<1x1x128xf32>
    %51 = arith.mulf %48, %50 : vector<1x1x128xf32>
    %52 = vector.shape_cast %14 : vector<8x128xf32> to vector<1x8x128xf32>
    %53 = vector.broadcast %51 : vector<1x1x128xf32> to vector<1x8x128xf32>
    %54 = arith.mulf %52, %53 : vector<1x8x128xf32>
    %55 = vector.shape_cast %54 : vector<1x8x128xf32> to vector<8x128xf32>
    %56 = arith.truncf %55 : vector<8x128xf32> to vector<8x128xbf16>
    %c0_38 = arith.constant 0 : index
    %c0_39 = arith.constant 0 : index
    %57 = vector.load %arg12[%c0_38, %c0_39] : memref<128x128xbf16, #tpu.memory_space<vmem>>, vector<128x128xbf16>
    %cst_40 = arith.constant dense<0.000000e+00> : vector<8x128xf32>
    %58 = tpu.matmul %56, %57, %cst_40 {dimension_numbers = #tpu.dot_dimension_numbers<[1], [0], [0], [1], [0, 0, 1, 1], [], []>} : vector<8x128xbf16>, vector<128x128xbf16>, vector<8x128xf32> -> vector<8x128xf32>
    %c0_41 = arith.constant 0 : index
    %c0_42 = arith.constant 0 : index
    %59 = vector.load %arg13[%c0_41, %c0_42] : memref<1x128xf32, #tpu.memory_space<vmem>>, vector<1x128xf32>
    %60 = vector.broadcast %59 : vector<1x128xf32> to vector<8x128xf32>
    %61 = arith.addf %58, %60 : vector<8x128xf32>
    %cst_43 = arith.constant 0.000000e+00 : f32
    %62 = vector.broadcast %cst_43 : f32 to vector<8x128xf32>
    %63 = arith.maximumf %61, %62 : vector<8x128xf32>
    %64 = vector.broadcast %1 : vector<8x1xf32> to vector<8x128xf32>
    %65 = arith.mulf %63, %64 : vector<8x128xf32>
    %66 = vector.shape_cast %65 : vector<8x128xf32> to vector<1x8x128xf32>
    %c0_44 = arith.constant 0 : index
    %c0_45 = arith.constant 0 : index
    %c0_46 = arith.constant 0 : index
    %67 = vector.load %arg16[%c0_44, %c0_45, %c0_46] : memref<1x8x128xf32, #tpu.memory_space<vmem>>, vector<1x8x128xf32>
    tpu.vector_store %arg16[%c0_44, %c0_45, %c0_46], %66 {strides = array<i32>} : memref<1x8x128xf32, #tpu.memory_space<vmem>>, vector<1x8x128xf32>,
    %68 = arith.truncf %65 : vector<8x128xf32> to vector<8x128xbf16>
    %c0_47 = arith.constant 0 : index
    %c0_48 = arith.constant 0 : index
    %69 = vector.load %arg14[%c0_47, %c0_48] : memref<128x128xbf16, #tpu.memory_space<vmem>>, vector<128x128xbf16>
    %cst_49 = arith.constant dense<0.000000e+00> : vector<8x128xf32>
    %70 = tpu.matmul %68, %69, %cst_49 {dimension_numbers = #tpu.dot_dimension_numbers<[1], [0], [0], [1], [0, 0, 1, 1], [], []>} : vector<8x128xbf16>, vector<128x128xbf16>, vector<8x128xf32> -> vector<8x128xf32>
    %c0_50 = arith.constant 0 : index
    %c0_51 = arith.constant 0 : index
    %71 = vector.load %arg15[%c0_50, %c0_51] : memref<1x128xf32, #tpu.memory_space<vmem>>, vector<1x128xf32>
    %72 = vector.broadcast %71 : vector<1x128xf32> to vector<8x128xf32>
    %73 = arith.addf %70, %72 : vector<8x128xf32>
    %74 = arith.negf %73 : vector<8x128xf32>
    %75 = math.exp %74 : vector<8x128xf32>
    %cst_52 = arith.constant 1.000000e+00 : f32
    %76 = vector.broadcast %cst_52 : f32 to vector<8x128xf32>
    %77 = arith.addf %76, %75 : vector<8x128xf32>
    %78 = arith.divf %76, %77 : vector<8x128xf32>
    %79 = vector.broadcast %1 : vector<8x1xf32> to vector<8x128xf32>
    %80 = arith.mulf %78, %79 : vector<8x128xf32>
    %81 = vector.shape_cast %80 : vector<8x128xf32> to vector<1x8x128xf32>
    %c0_53 = arith.constant 0 : index
    %c0_54 = arith.constant 0 : index
    %c0_55 = arith.constant 0 : index
    %82 = vector.load %arg17[%c0_53, %c0_54, %c0_55] : memref<1x8x128xf32, #tpu.memory_space<vmem>>, vector<1x8x128xf32>
    tpu.vector_store %arg17[%c0_53, %c0_54, %c0_55], %81 {strides = array<i32>} : memref<1x8x128xf32, #tpu.memory_space<vmem>>, vector<1x8x128xf32>,
    return
  }
  func.func @transform_0(%arg0: i32) -> (i32, i32, i32) {
    %c0_i32 = arith.constant 0 : i32
    %c0_i32_0 = arith.constant 0 : i32
    %c0_i32_1 = arith.constant 0 : i32
    return %arg0, %c0_i32, %c0_i32_0 : i32, i32, i32
  }
  func.func @transform_1(%arg0: i32) -> (i32, i32, i32) {
    %c0_i32 = arith.constant 0 : i32
    %c0_i32_0 = arith.constant 0 : i32
    %c0_i32_1 = arith.constant 0 : i32
    return %arg0, %c0_i32, %c0_i32_0 : i32, i32, i32
  }
  func.func @transform_2(%arg0: i32) -> (i32, i32, i32) {
    %c0_i32 = arith.constant 0 : i32
    %c0_i32_0 = arith.constant 0 : i32
    %c0_i32_1 = arith.constant 0 : i32
    return %arg0, %c0_i32, %c0_i32_0 : i32, i32, i32
  }
  func.func @transform_3(%arg0: i32) -> (i32, i32, i32) {
    %c0_i32 = arith.constant 0 : i32
    %c0_i32_0 = arith.constant 0 : i32
    %c0_i32_1 = arith.constant 0 : i32
    return %arg0, %c0_i32, %c0_i32_0 : i32, i32, i32
  }
  func.func @transform_4(%arg0: i32) -> (i32, i32, i32) {
    %c0_i32 = arith.constant 0 : i32
    %c0_i32_0 = arith.constant 0 : i32
    %c0_i32_1 = arith.constant 0 : i32
    return %arg0, %c0_i32, %c0_i32_0 : i32, i32, i32
  }
  func.func @transform_5(%arg0: i32) -> (i32, i32) {
    %c0_i32 = arith.constant 0 : i32
    %c0_i32_0 = arith.constant 0 : i32
    %c0_i32_1 = arith.constant 0 : i32
    return %c0_i32, %c0_i32_0 : i32, i32
  }
  func.func @transform_6(%arg0: i32) -> (i32, i32) {
    %c0_i32 = arith.constant 0 : i32
    %c0_i32_0 = arith.constant 0 : i32
    %c0_i32_1 = arith.constant 0 : i32
    return %c0_i32, %c0_i32_0 : i32, i32
  }
  func.func @transform_7(%arg0: i32) -> (i32, i32) {
    %c0_i32 = arith.constant 0 : i32
    %c0_i32_0 = arith.constant 0 : i32
    %c0_i32_1 = arith.constant 0 : i32
    return %c0_i32, %c0_i32_0 : i32, i32
  }
  func.func @transform_8(%arg0: i32) -> (i32, i32) {
    %c0_i32 = arith.constant 0 : i32
    %c0_i32_0 = arith.constant 0 : i32
    %c0_i32_1 = arith.constant 0 : i32
    return %c0_i32, %c0_i32_0 : i32, i32
  }
  func.func @transform_9(%arg0: i32) -> (i32, i32) {
    %c0_i32 = arith.constant 0 : i32
    %c0_i32_0 = arith.constant 0 : i32
    %c0_i32_1 = arith.constant 0 : i32
    return %c0_i32, %c0_i32_0 : i32, i32
  }
  func.func @transform_10(%arg0: i32) -> (i32, i32) {
    %c0_i32 = arith.constant 0 : i32
    %c0_i32_0 = arith.constant 0 : i32
    %c0_i32_1 = arith.constant 0 : i32
    return %c0_i32, %c0_i32_0 : i32, i32
  }
  func.func @transform_11(%arg0: i32) -> (i32, i32) {
    %c0_i32 = arith.constant 0 : i32
    %c0_i32_0 = arith.constant 0 : i32
    %c0_i32_1 = arith.constant 0 : i32
    return %c0_i32, %c0_i32_0 : i32, i32
  }
  func.func @transform_12(%arg0: i32) -> (i32, i32) {
    %c0_i32 = arith.constant 0 : i32
    %c0_i32_0 = arith.constant 0 : i32
    %c0_i32_1 = arith.constant 0 : i32
    return %c0_i32, %c0_i32_0 : i32, i32
  }
  func.func @transform_13(%arg0: i32) -> (i32, i32) {
    %c0_i32 = arith.constant 0 : i32
    %c0_i32_0 = arith.constant 0 : i32
    %c0_i32_1 = arith.constant 0 : i32
    return %c0_i32, %c0_i32_0 : i32, i32
  }
  func.func @transform_14(%arg0: i32) -> (i32, i32) {
    %c0_i32 = arith.constant 0 : i32
    %c0_i32_0 = arith.constant 0 : i32
    %c0_i32_1 = arith.constant 0 : i32
    return %c0_i32, %c0_i32_0 : i32, i32
  }
  func.func @transform_15(%arg0: i32) -> (i32, i32, i32) {
    %c0_i32 = arith.constant 0 : i32
    %c0_i32_0 = arith.constant 0 : i32
    %c0_i32_1 = arith.constant 0 : i32
    return %arg0, %c0_i32, %c0_i32_0 : i32, i32, i32
  }
  func.func @transform_16(%arg0: i32) -> (i32, i32, i32) {
    %c0_i32 = arith.constant 0 : i32
    %c0_i32_0 = arith.constant 0 : i32
    %c0_i32_1 = arith.constant 0 : i32
    return %arg0, %c0_i32, %c0_i32_0 : i32, i32, i32
  }
}

</mosaic_0001>

<bundles_post_ra>
// kernel: tpu_custom_call.1
= control target key start
LH: loop header
LB: loop body
LE: loop exit
PB: predicated region body
PF: predicated region fallthrough
CT: control target
= control target key end

     0   :  { %s2555_s0 = inlined_call_operand.vmem [shape: bf16[2,8,128], index: 0, kind: input, shape index: {}]   ;;  %s2556_s1 = inlined_call_operand.vmem [shape: f32[2,8,1], index: 1, kind: input, shape index: {}]   ;;  %s2557_s2 = inlined_call_operand.vmem [shape: bf16[2,8,128], index: 2, kind: input, shape index: {}]   ;;  %s2558_s3 = inlined_call_operand.vmem [shape: bf16[2,8,8], index: 3, kind: input, shape index: {}]   ;;  %s2559_s4 = inlined_call_operand.vmem [shape: f32[2,8,1], index: 4, kind: input, shape index: {}]   ;;  %s2560_s5 = inlined_call_operand.hbm [shape: bf16[128,128], index: 5, kind: input, shape index: {}]   ;;  %s2561_s6 = inlined_call_operand.vmem [shape: f32[1,128], index: 6, kind: input, shape index: {}]   ;;  %s2562_s7 = inlined_call_operand.hbm [shape: bf16[128,128], index: 7, kind: input, shape index: {}]   ;;  %s2563_s8 = inlined_call_operand.vmem [shape: f32[1,128], index: 8, kind: input, shape index: {}]   ;;  %s2564_s9 = inlined_call_operand.hbm [shape: bf16[128,128], index: 9, kind: input, shape index: {}]   ;;  %s2565_s10 = inlined_call_operand.vmem [shape: f32[1,128], index: 10, kind: input, shape index: {}]   ;;  %s2566_s11 = inlined_call_operand.hbm [shape: bf16[128,128], index: 11, kind: input, shape index: {}]   ;;  %s2567_s12 = inlined_call_operand.vmem [shape: f32[1,128], index: 12, kind: input, shape index: {}]   ;;  %s2568_s13 = inlined_call_operand.hbm [shape: bf16[128,128], index: 13, kind: input, shape index: {}]   ;;  %s2569_s14 = inlined_call_operand.vmem [shape: f32[1,128], index: 14, kind: input, shape index: {}]   ;;  %s2570_s15 = inlined_call_operand.hbm [shape: f32[2,8,128], index: 15, kind: output, shape index: {0}]   ;;  %s2571_s16 = inlined_call_operand.hbm [shape: f32[2,8,128], index: 16, kind: output, shape index: {1}]  }
   0x1   :  { %2582 = sst [smem:[#allocation25_spill]] %s2555_s0 }
   0x2   :  { %2583 = sst [smem:[#allocation26_spill]] %s2562_s7 }
   0x3   :  { %2584 = sst [smem:[#allocation27_spill]] %s2571_s16 }
   0x4   :  { %22 = vsyncpa [#allocation3], 0 }
   0x5   :  { %23 = vsyncpa [#allocation6], 0 }
   0x6   :  { %24 = vsyncpa [#allocation9], 0 }
   0x7   :  { %25 = vsyncpa [#allocation4], 0 }
   0x8   :  { %27 = vsyncpa [#allocation4 + $0x1], 0 }
   0x9   :  { %28 = vsyncpa [#allocation13], 0 }
   0xa   :  { %30 = vsyncpa [#allocation13 + $0x1], 0  ;;  %s2260_s21 = smov 0   ;;  %s2262_s22 = smov 0  }
   0xb   :  { %s2264_s23 = smov 0   ;;  %s2266_s24 = smov 0  }
   0xc LB: > { %2585 = sst [smem:[#allocation19_spill]] %s2149_s21  ;;  %s2281_s25 = sadd.s32 4294967295, %s2161_s24   ;;  %s2161_s24 = sphi %s2266_s24, %s2611_s24   ;;  %s2157_s23 = sphi %s2264_s23, %s2613_s23   ;;  %s2153_s22 = sphi %s2262_s22, %s2615_s22   ;;  %s2149_s21 = sphi %s2260_s21, %s2614_s21  }
   0xd   : > { %2586 = sst [smem:[#allocation20_spill]] %s2157_s23  ;;  %s1554_s26 = sadd.s32 4294967294, %s2161_s24  }
   0xe   : > { %2587 = sst [smem:[#allocation21_spill]] %s2161_s24  ;;  %s2285_s27 = sadd.s32 1, %s2161_s24  }
   0xf   : > { %2588 = sst [smem:[#allocation22_spill]] %s2285_s27  ;;  %s383_s28 = sadd.s32 1, %s2157_s23 }
  0x10   : > { %s380_s29 = ssub.s32 %s2161_s24, %s2285_s27  ;;  %p393_p0 = scmp.ne.s32.totalorder %s2157_s23, %s2153_s22 }
  0x11   : > { %p381_p1 = scmp.eq.s32.totalorder %s380_s29, 0  ;;  %p394_p2 = scmp.eq.s32.totalorder %s2281_s25, 1 }
  0x12   : > { %p399_p3 = scmp.ne.s32.totalorder %s2153_s22, %s2149_s21  ;;  %p400_p4 = scmp.eq.s32.totalorder %s1554_s26, 1 }
  0x13   : > { %s2296_s30 = scalar_select %p381_p1, %s2157_s23, %s383_s28  }
  0x14   : > { %p2298_p5 = por %p394_p2, %p393_p0  ;;  %p2302_p6 = por %p400_p4, %p399_p3 }
  0x15   : > { %2589 = sst [smem:[#allocation23_spill]] %s2296_s30  ;;  %p1555_p7 = scmp.ge.s32.totalorder %s2161_s24, 1 }
  0x16   : > { %s2591_s17 = scalar_select %p2302_p6, 1, 0 }
  0x17   : > { %p433_p8 = scmp.lt.s32.totalorder %s2161_s24, 3  ;;  %p2579_p9 = scmp.eq.s32.totalorder %s2281_s25, 0 }
  0x18   : > { %2592 = sst [smem:[#allocation24_spill]] %s2591_s17  ;;  %s2163_s19 = smov [#allocation5]  }
  0x19   : > { %p2309_p10 = pnand %p1555_p7, %p433_p8  ;;  %s461_s20 = sshll.u32 %s2163_s19, 4  ;;  %s462_s20 = int_to_ptr.vmem [resolvable:$true] %s461_s20 }
  0x1a   : > { %s2164_s28 = smov [#allocation8]   ;;  %s2165_s30 = smov [#allocation2]  }
  0x1b   : > { %p1805_p11 = pneg %p2309_p10  ;;  %s493_s29 = sshll.u32 %s2164_s28, 4  ;;  %s494_s29 = int_to_ptr.vmem [resolvable:$true] %s493_s29 }
  0x1c   : > { %s445_s23 = sshll.u32 %s2165_s30, 4  ;;  %s1940_s17 = scalar_lea.vmem %s462_s20, 1024  ;;  %s446_s23 = int_to_ptr.vmem [resolvable:$true] %s445_s23 }
  0x1d   : > { %p2317_p12 = pnand %p2579_p9, %p1805_p11  ;;  %p1941_p0 = scmp.ne.s32.totalorder %s462_s20, %s1940_s17 }
  0x1e   : > { %p1948_p3 = scmp.lt.s32.totalorder %s462_s20, %s462_s20  ;;  %p1949_p4 = scmp.lt.s32.totalorder %s1940_s17, %s1940_s17 }
  0x1f   : > { %p2323_p13 = pneg %p2317_p12 }
  0x20   : > { %p1950_p7 = por %p1949_p4, %p1948_p3 }
  0x21   : > { %p1943_p1 = pnand %p1941_p0, %p2323_p13 }
  0x23   : > { %p1944_p2 = pneg %p1943_p1 }
  0x25   : > { %p1951_p8 = pnand %p1950_p7, %p1944_p2 }
  0x27   : > { %1954 = shalt.err (!%p1951_p8)
}
  0x28   : > { %s2166_s19 = smov 64   ;;  %s2167_s30 = smov 4  }
  0x29   : > { %s2596_s7 = sld [smem:[#allocation26_spill]]  ;;  %s1966_s24 = scalar_lea.vmem %s494_s29, 1024 }
  0x2a   : > { %p1967_p11 = scmp.ne.s32.totalorder %s494_s29, %s1966_s24  ;;  %p1974_p3 = scmp.lt.s32.totalorder %s494_s29, %s494_s29 }
  0x2b   : > { %p1975_p2 = scmp.lt.s32.totalorder %s1966_s24, %s1966_s24 }
  0x2c   : > { %p1969_p0 = pnand %p1967_p11, %p2323_p13 }
  0x2d   : > { %p1976_p4 = por %p1975_p2, %p1974_p3 }
  0x2e   : > { %p1970_p1 = pneg %p1969_p0 }
  0x2f   : > { %1811 = dma.hbm_to_vmem [thread:$0]  (!%p2317_p12), %s2596_s7, 1024, %s462_s20, [#allocation6], %s2166_s19, %s2166_s19, %s2167_s30  }
  0x30   : > { %p1977_p7 = pnand %p1976_p4, %p1970_p1 }
  0x32   : > { %1980 = shalt.err (!%p1977_p7)
}
  0x33   : > { %1817 = dma.hbm_to_vmem [thread:$0]  (!%p2317_p12), %s2566_s11, 1024, %s494_s29, [#allocation9], %s2166_s19, %s2166_s19, %s2167_s30  }
  0x34   : > { %s1992_s21 = scalar_lea.vmem %s446_s23, 1024  ;;  %p2000_p9 = scmp.lt.s32.totalorder %s446_s23, %s446_s23 }
  0x35   : > { %p1993_p8 = scmp.ne.s32.totalorder %s446_s23, %s1992_s21  ;;  %p2001_p3 = scmp.lt.s32.totalorder %s1992_s21, %s1992_s21 }
  0x37   : > { %p1995_p11 = pnand %p1993_p8, %p2323_p13  ;;  %p2002_p1 = por %p2001_p3, %p2000_p9 }
  0x39   : > { %p1996_p0 = pneg %p1995_p11 }
  0x3b   : > { %p2003_p2 = pnand %p2002_p1, %p1996_p0 }
  0x3d   : > { %2006 = shalt.err (!%p2003_p2)
}
  0x3e   : > { %1808 = dma.hbm_to_vmem [thread:$0]  (!%p2317_p12), %s2560_s5, 1024, %s446_s23, [#allocation3], %s2166_s19, %s2166_s19, %s2167_s30  }
  0x3f   : > { %s2168_s20 = smov [#allocation7]   ;;  %s2169_s28 = smov [#allocation10]  }
  0x40   : > { %s477_s29 = sshll.u32 %s2168_s20, 4  ;;  %s509_s17 = sshll.u32 %s2169_s28, 4  ;;  %s478_s29 = int_to_ptr.vmem [resolvable:$true] %s477_s29  ;;  %s510_s17 = int_to_ptr.vmem [resolvable:$true] %s509_s17 }
  0x41   : > { %s2018_s7 = scalar_lea.vmem %s478_s29, 1024  ;;  %p2026_p8 = scmp.lt.s32.totalorder %s478_s29, %s478_s29 }
  0x42   : > { %p2019_p4 = scmp.ne.s32.totalorder %s478_s29, %s2018_s7  ;;  %p2027_p11 = scmp.lt.s32.totalorder %s2018_s7, %s2018_s7 }
  0x44   : > { %p2021_p9 = pnand %p2019_p4, %p2323_p13  ;;  %p2028_p0 = por %p2027_p11, %p2026_p8 }
  0x46   : > { %p2022_p7 = pneg %p2021_p9 }
  0x48   : > { %p2029_p3 = pnand %p2028_p0, %p2022_p7 }
  0x4a   : > { %2032 = shalt.err (!%p2029_p3)
}
  0x4b   : > { %1814 = dma.hbm_to_vmem [thread:$0]  (!%p2317_p12), %s2564_s9, 1024, %s478_s29, [#allocation6], %s2166_s19, %s2166_s19, %s2167_s30  }
  0x4c   : > { %s2044_s24 = scalar_lea.vmem %s510_s17, 1024  ;;  %p2052_p9 = scmp.lt.s32.totalorder %s510_s17, %s510_s17 }
  0x4d   : > { %p2045_p1 = scmp.ne.s32.totalorder %s510_s17, %s2044_s24  ;;  %p2053_p8 = scmp.lt.s32.totalorder %s2044_s24, %s2044_s24 }
  0x4f   : > { %p2047_p2 = pnand %p2045_p1, %p2323_p13  ;;  %p2054_p7 = por %p2053_p8, %p2052_p9 }
  0x51   : > { %p2048_p4 = pneg %p2047_p2 }
  0x53   : > { %p2055_p11 = pnand %p2054_p7, %p2048_p4 }
  0x55   : > { %2058 = shalt.err (!%p2055_p11)
}
  0x56   : > { %1820 = dma.hbm_to_vmem [thread:$0]  (!%p2317_p12), %s2568_s13, 1024, %s510_s17, [#allocation9], %s2166_s19, %s2166_s19, %s2167_s30  }
  0x57   : > { %563 = sbr.rel (%p2309_p10) target bundleno = 1195 (0x4ab), region = 80  ;;  %p2597_p13 = scmp.eq.s32.totalorder (!%p2309_p10), %s2281_s25, 0 }
  0x5c   : > { %2128 = dma.done.wait (%p2597_p13), [#allocation3], 1024   ;;  %p2598_p0 = pmov %p2597_p13 }
  0x5e   : > { %2130 = vsyncadd (%p2598_p0), [#allocation3], 4294966272  ;;  %p2599_p3 = pmov %p2598_p0 }
  0x5f   : > { %p2600_p1 = pmov %p2598_p0 }
  0x60   : > { %2132 = dma.done.wait (%p2599_p3), [#allocation6], 2048  }
  0x61   : > { %2134 = vsyncadd (%p2600_p1), [#allocation6], 4294965248  ;;  %p2601_p2 = pmov %p2598_p0 }
  0x62   : > { %p2602_p12 = pmov %p2598_p0 }
  0x63   : > { %2136 = dma.done.wait (%p2601_p2), [#allocation9], 2048  }
  0x64   : > { %2138 = vsyncadd (%p2602_p12), [#allocation9], 4294965248  ;;  %v2170_v0 = vmov 0.0   ;;  %vm2171_vm0 = vmmov 0   ;;  %v2172_v1 = vmov 0   ;;  %v1883_v2 = vld [vmem:[#allocation2 + $0x38] sm:$0xff]  }
  0x65   : > { %1675 = vmatprep.subr.bf16.mxu0 %v2170_v0  ;;  %1695 = vmatprep.subr.bf16.mxu1 %v2170_v0  ;;  %v1884_v3 = vld [vmem:[#allocation5 + $0x38] sm:$0xff]   ;;  %v1885_v4 = vld [vmem:[#allocation2 + $0x30] sm:$0xff]   ;;  %p649_p10 = scmp.lt.s32.totalorder %s2281_s25, 1  ;;  %v1887_v6 = vld [vmem:[#allocation2 + $0x28] sm:$0xff]   ;;  %vm1075_vm1 = vcmask 7168   ;;  %s2603_s24 = sld [smem:[#allocation25_spill]] }
  0x66   : > { %1691 = vmatprep.mubr.msk.bf16.mxu0 %vm2171_vm0, %v2170_v0  ;;  %1711 = vmatprep.mubr.msk.bf16.mxu1 %vm2171_vm0, %v2170_v0  ;;  %v1886_v5 = vld [vmem:[#allocation5 + $0x30] sm:$0xff]   ;;  %v1888_v7 = vld [vmem:[#allocation5 + $0x28] sm:$0xff]   ;;  %v1889_v8 = vld [vmem:[#allocation2 + $0x20] sm:$0xff]   ;;  %vm916_vm2 = vcmask 1043456   ;;  %vm912_vm3 = vcmask 64512   ;;  %s2489_s16 = sand.u32 1, %s2153_s22  }
  0x67   : > { %1881 = vset.pattern.permute.xlu0 %v2172_v1  ;;  %1882 = vset.pattern.permute.xlu1 %v2172_v1  ;;  %s650_s27 = scalar_select %p649_p10, %s2281_s25, 1  ;;  %v1890_v9 = vld [vmem:[#allocation5 + $0x20] sm:$0xff]   ;;  %v1891_v10 = vld [vmem:[#allocation2 + $0x18] sm:$0xff]   ;;  %v1893_v13 = vld [vmem:[#allocation2 + $0x10] sm:$0xff]  }
  0x68   : > { %1676 = vmatpush3.bf16.msra.mxu0 %v1883_v2  ;;  %1696 = vmatpush3.bf16.msra.mxu1 %v1884_v3  ;;  %v1892_v11 = vld [vmem:[#allocation5 + $0x18] sm:$0xff]   ;;  %v1894_v14 = vld [vmem:[#allocation5 + $0x10] sm:$0xff]   ;;  %v1895_v18 = vld [vmem:[#allocation2 + $0x8] sm:$0xff]   ;;  %s2580_s26 = sshll.u32 %s2281_s25, 7  ;;  %s2173_s23 = smov [#allocation11]  }
  0x69   : > { %1677 = vmatprep.subr.bf16.mxu0 %v2170_v0  ;;  %1697 = vmatprep.subr.bf16.mxu1 %v2170_v0  ;;  %s1571_s18 = sshll.u32 %s650_s27, 3  ;;  %s2413_s17 = sshll.u32 %s650_s27, 2  ;;  %v1896_v20 = vld [vmem:[#allocation5 + $0x8] sm:$0xff]   ;;  %v1897_v22 = vld [vmem:[#allocation2] sm:$0xff]   ;;  %v1899_v31 = vld [vmem:[#allocation7 + $0x38] sm:$0xff]  }
  0x6a   : > { %s668_s30 = scalar_lea.vmem %s2559_s4, %s1571_s18  ;;  %s656_s28 = scalar_lea.vmem %s2556_s1, %s1571_s18  ;;  %v1898_v24 = vld [vmem:[#allocation5] sm:$0xff]   ;;  %v1900_v32 = vld [vmem:[#allocation7 + $0x30] sm:$0xff]   ;;  %v1901_v33 = vld [vmem:[#allocation7 + $0x28] sm:$0xff]  }
  0x6b   : > { %v671_v12 = vld [vmem:[%s668_s30] sm:$0xff]  ;;  %s652_s7 = scalar_lea.vmem %s2603_s24, %s2413_s17  ;;  %s660_s18 = scalar_lea.vmem %s2557_s2, %s2413_s17  ;;  %v1903_v35 = vld [vmem:[#allocation7 + $0x18] sm:$0xff]   ;;  %v1904_v36 = vld [vmem:[#allocation7 + $0x10] sm:$0xff]  }
  0x6c   : > { %1678 = vmatpush3.bf16.msra.mxu0 %v1885_v4  ;;  %1698 = vmatpush3.bf16.msra.mxu1 %v1886_v5  ;;  %v1076_v15 = vsel %vm1075_vm1, %v671_v12, 0.0  ;;  %v670_v17 = vld [vmem:[%s656_s28] sm:$0xff]  ;;  %v1905_v37 = vld [vmem:[#allocation7 + $0x8] sm:$0xff]   ;;  %s664_s29 = scalar_lea.vmem %s2558_s3, %s2413_s17  ;;  %v1907_v55 = vld [vmem:[#allocation8 + $0x38] sm:$0xff]   ;;  %s2581_s27 = sshll.u32 %s2489_s16, 3 }
  0x6d   : > { %1679 = vmatprep.subr.bf16.mxu0 %v2170_v0  ;;  %1699 = vmatprep.subr.bf16.mxu1 %v2170_v0  ;;  %v1077_v16 = vrot.slane %v1076_v15, 4  ;;  %v672_v26 = vld [vmem:[%s652_s7] sm:$0xf]  ;;  %v1908_v56 = vld [vmem:[#allocation8 + $0x30] sm:$0xff]   ;;  %v1909_v62 = vld [vmem:[#allocation8 + $0x28] sm:$0xff]   ;;  %s1350_s20 = scalar_lea.hbm %s2570_s15, %s2580_s26  ;;  %s1334_s28 = scalar_lea.sflag [#allocation4], %s2489_s16 }
  0x6e   : > { %906 = vperm.xlu0 %1881, %v671_v12   ;;  %v791_v28 = vld [vmem:[%s660_s18] sm:$0xf]  ;;  %v1911_v1 = vld [vmem:[#allocation8 + $0x18] sm:$0xff]   ;;  %v1912_v2 = vld [vmem:[#allocation8 + $0x10] sm:$0xff]   ;;  %s641_s18 = scalar_lea.vmem [#allocation11], %s2581_s27  ;;  %s2063_s21 = sshll.u32 %s2173_s23, 4  ;;  %s2064_s21 = int_to_ptr.vmem [resolvable:$false] %s2063_s21 }
  0x6f   : > { %v1078_v19 = vadd.f32 %v1077_v16, %v1076_v15  ;;  %v1902_v34 = vld [vmem:[#allocation7 + $0x20] sm:$0xff]   ;;  %v1913_v3 = vld [vmem:[#allocation8 + $0x8] sm:$0xff]   ;;  %v1915_v5 = vld [vmem:[#allocation10 + $0x38] sm:$0xff]   ;;  %s2065_s24 = scalar_lea.vmem %s2064_s21, 256 }
  0x70   : > { %1680 = vmatpush3.bf16.msra.mxu0 %v1887_v6  ;;  %1700 = vmatpush3.bf16.msra.mxu1 %v1888_v7  ;;  %v1584_v38 = vld [vmem:[%s2563_s8] ss:$0 sm:$0xff]  ;;  %v1916_v6 = vld [vmem:[#allocation10 + $0x30] sm:$0xff]   ;;  %v1917_v7 = vld [vmem:[#allocation10 + $0x28] sm:$0xff]  }
  0x71   : > { %1681 = vmatprep.subr.bf16.mxu0 %v2170_v0  ;;  %1701 = vmatprep.subr.bf16.mxu1 %v2170_v0  ;;  %v1079_v21 = vrot.slane %v1078_v19, 2  ;;  %v910_v53 = vld [vmem:[%s664_s29] sm:$0xf]  ;;  %s1352_s29 = sshll.u32 %s641_s18, 4  ;;  %s1353_s29 = int_to_ptr.vmem [resolvable:$true] %s1352_s29 }
  0x72   : > { %787 = vperm.xlu0 %1881, %v670_v17   ;;  %v1906_v54 = vld [vmem:[#allocation7] sm:$0xff]   ;;  %s2059_s17 = scalar_lea.vmem %s1353_s29, 128  ;;  %p2066_p7 = scmp.lt.s32.totalorder %s1353_s29, %s2064_s21 }
  0x73   : > { %v1080_v23 = vadd.f32 %v1079_v21, %v1078_v19  ;;  %v1910_v63 = vld [vmem:[#allocation8 + $0x20] sm:$0xff]   ;;  %p2060_p4 = scmp.ne.s32.totalorder %s1353_s29, %s2059_s17  ;;  %p2067_p11 = scmp.lt.s32.totalorder %s2065_s24, %s2059_s17 }
  0x74   : > { %1682 = vmatpush3.bf16.msra.mxu0 %v1889_v8  ;;  %1702 = vmatpush3.bf16.msra.mxu1 %v1890_v9  ;;  %v1914_v4 = vld [vmem:[#allocation8] sm:$0xff]   ;;  %v1919_v9 = vld [vmem:[#allocation10 + $0x18] sm:$0xff]  }
  0x75   : > { %1683 = vmatprep.subr.bf16.mxu0 %v2170_v0  ;;  %1703 = vmatprep.subr.bf16.mxu1 %v2170_v0  ;;  %v1081_v25 = vrot.slane %v1080_v23, 1  ;;  %v1918_v8 = vld [vmem:[#allocation10 + $0x20] sm:$0xff]   ;;  %p2061_p9 = pnand %p2060_p4, %p2298_p5  ;;  %p2068_p13 = por %p2067_p11, %p2066_p7 }
  0x77   : > { %v1082_v27 = vadd.f32 %v1081_v25, %v1080_v23  ;;  %p2062_p8 = pneg %p2061_p9 }
  0x78   : > { %1684 = vmatpush3.bf16.msra.mxu0 %v1891_v10  ;;  %1704 = vmatpush3.bf16.msra.mxu1 %v1892_v11  ;;  %v1920_v10 = vld [vmem:[#allocation10 + $0x10] sm:$0xff]   ;;  %v1594_v11 = vld [vmem:[%s2565_s10] ss:$0 sm:$0xff] }
  0x79   : > { %1685 = vmatprep.subr.bf16.mxu0 %v2170_v0  ;;  %1705 = vmatprep.subr.bf16.mxu1 %v2170_v0  ;;  %v1083_v29 = vmax.f32 %v1082_v27, 1.0  ;;  %p2069_p0 = pnand %p2068_p13, %p2062_p8 }
  0x7b   : > { %1923 = vrcp.f32 %v1083_v29 }
  0x7c   : > { %1686 = vmatpush3.bf16.msra.mxu0 %v1893_v13  ;;  %1706 = vmatpush3.bf16.msra.mxu1 %v1894_v14 }
  0x7d   : > { %1687 = vmatprep.subr.bf16.mxu0 %v2170_v0  ;;  %1707 = vmatprep.subr.bf16.mxu1 %v2170_v0 }
  0x80   : > { %1688 = vmatpush3.bf16.msra.mxu0 %v1895_v18  ;;  %1708 = vmatpush3.bf16.msra.mxu1 %v1896_v20  ;;  %v1575_v20 = vld [vmem:[%s2561_s6] ss:$0 sm:$0xff] }
  0x81   : > { %1689 = vmatprep.subr.bf16.mxu0 %v2170_v0  ;;  %1709 = vmatprep.subr.bf16.mxu1 %v2170_v0 }
  0x84   : > { %1690 = vmatpush3.bf16.msra.mxu0 %v1897_v22  ;;  %1710 = vmatpush3.bf16.msra.mxu1 %v1898_v24 }
  0x85   : > { %1715 = vmatprep.subr.bf16.mxu0 %v2170_v0  ;;  %1721 = vmatprep.subr.bf16.mxu1 %v2170_v0 }
  0x87   : > { %1692 = vmatmul.mubr.bf16.vlgmr.msra.gmra.mxu0 %v672_v26  ;;  %1712 = vmatmul.mubr.bf16.vlgmr.msra.gmra.mxu1 %v791_v28 }
  0x88   : > { %1717 = vmatprep.mubr.msk.bf16.mxu0 %vm2171_vm0, %v2170_v0  ;;  %1737 = vmatprep.mubr.msk.bf16.mxu1 %vm2171_vm0, %v2170_v0  ;;  %v1924_v30 = vpop.eup %1923 }
  0x89   : > { %1093 = vperm.xlu1 %1882, %v1924_v30   ;;  %1722 = vmatpush3.bf16.msra.mxu1 %v1899_v31 }
  0x8a   : > { %1723 = vmatprep.subr.bf16.mxu1 %v2170_v0 }
  0x8d   : > { %1724 = vmatpush3.bf16.msra.mxu1 %v1900_v32 }
  0x8e   : > { %1725 = vmatprep.subr.bf16.mxu1 %v2170_v0 }
  0x91   : > { %1726 = vmatpush3.bf16.msra.mxu1 %v1901_v33 }
  0x92   : > { %1727 = vmatprep.subr.bf16.mxu1 %v2170_v0 }
  0x95   : > { %1728 = vmatpush3.bf16.msra.mxu1 %v1902_v34  ;;  %v1921_v34 = vld [vmem:[#allocation10 + $0x8] sm:$0xff]  }
  0x96   : > { %1729 = vmatprep.subr.bf16.mxu1 %v2170_v0 }
  0x99   : > { %1730 = vmatpush3.bf16.msra.mxu1 %v1903_v35  ;;  %v1922_v35 = vld [vmem:[#allocation10] sm:$0xff]  }
  0x9a   : > { %1731 = vmatprep.subr.bf16.mxu1 %v2170_v0 }
  0x9d   : > { %1732 = vmatpush3.bf16.msra.mxu1 %v1904_v36  ;;  %v1603_v36 = vld [vmem:[%s2567_s12] ss:$0 sm:$0xff] }
  0x9e   : > { %1733 = vmatprep.subr.bf16.mxu1 %v2170_v0 }
  0xa1   : > { %1734 = vmatpush3.bf16.msra.mxu1 %v1905_v37 }
  0xa2   : > { %1735 = vmatprep.subr.bf16.mxu1 %v2170_v0 }
  0xa5   : > { %1736 = vmatpush3.bf16.msra.mxu1 %v1906_v54 }
  0xa6   : > { %1761 = vmatprep.subr.bf16.mxu1 %v2170_v0 }
  0xe9   : > { %v2447_v46 = vpop.permute.xlu0 %906 }
  0xed   : > { %v2481_v27 = vpop.permute.xlu0 %787 }
 0x104   : > { %v1094_v28 = vpop.permute.xlu1 %1093 }
 0x147   : > { %v2445_v39 = vpop.f32.mrf.mxu0  ;;  %v897_v40 = vpop.f32.mrf.mxu1 }
 0x148   : > { %v898_v41 = vadd.f32 %v1584_v38, %v897_v40  ;;  %v779_v22 = vadd.f32 %v1575_v20, %v2445_v39 }
 0x149   : > { %v1693_v42 = vpop.f32.mrf.mxu0  ;;  %v1713_v43 = vpop.f32.mrf.mxu1 }
 0x14a   : > { %v903_v44 = vmax.f32 %v898_v41, 0.0  ;;  %v784_v25 = vmax.f32 %v779_v22, 0.0 }
 0x14b   : > { %v781_v45 = vpop.f32.mrf.mxu0  ;;  %v900_v47 = vpop.f32.mrf.mxu1 }
 0x14c   : > { %v909_v48 = vmul.f32 %v2447_v46, %v903_v44  ;;  %v790_v30 = vmul.f32 %v2481_v27, %v784_v25 }
 0x14d   : > { %v1694_v49 = vpop.f32.mrf.mxu0  ;;  %v1714_v50 = vpop.f32.mrf.mxu1 }
 0x14e   : > { %v911_v51 = vpack.c.bf16 %v909_v48, %v909_v48 }
 0x150   : > { %v918_v52 = vsel %vm916_vm2, %v911_v51, 0 }
 0x151   : > { %1716 = vmatpush3.bf16.msra.mxu0 %v918_v52 }
 0x152   : > { %1741 = vmatprep.subr.bf16.mxu0 %v2170_v0 }
 0x154   : > { %1718 = vmatmul.mubr.msk.bf16.vlgmr.msra.gmra.mxu0 %vm912_vm3, %v910_v53 }
 0x155   : > { %1757 = vmatprep.mubr.msk.bf16.mxu0 %vm2171_vm0, %v2170_v0  ;;  %1742 = vmatpush3.bf16.msra.mxu0 %v1907_v55 }
 0x156   : > { %1743 = vmatprep.subr.bf16.mxu0 %v2170_v0 }
 0x159   : > { %1744 = vmatpush3.bf16.msra.mxu0 %v1908_v56 }
 0x15a   : > { %1745 = vmatprep.subr.bf16.mxu0 %v2170_v0 }
 0x15d   : > { %1746 = vmatpush3.bf16.msra.mxu0 %v1909_v62 }
 0x15e   : > { %1747 = vmatprep.subr.bf16.mxu0 %v2170_v0 }
 0x161   : > { %1748 = vmatpush3.bf16.msra.mxu0 %v1910_v63 }
 0x162   : > { %1749 = vmatprep.subr.bf16.mxu0 %v2170_v0 }
 0x165   : > { %1750 = vmatpush3.bf16.msra.mxu0 %v1911_v1 }
 0x166   : > { %1751 = vmatprep.subr.bf16.mxu0 %v2170_v0 }
 0x169   : > { %1752 = vmatpush3.bf16.msra.mxu0 %v1912_v2 }
 0x16a   : > { %1753 = vmatprep.subr.bf16.mxu0 %v2170_v0 }
 0x16d   : > { %1754 = vmatpush3.bf16.msra.mxu0 %v1913_v3 }
 0x16e   : > { %1755 = vmatprep.subr.bf16.mxu0 %v2170_v0 }
 0x171   : > { %1756 = vmatpush3.bf16.msra.mxu0 %v1914_v4 }
 0x214   : > { %v954_v57 = vpop.f32.mrf.mxu0 }
 0x215   : > { %v960_v58 = vpack.c.bf16 %v954_v57, %v954_v57 }
 0x216   : > { %v1719_v59 = vpop.f32.mrf.mxu0 }
 0x217   : > { %1738 = vmatmul.mubr.bf16.vlgmr.msra.gmra.mxu1 %v960_v58 }
 0x218   : > { %v957_v60 = vpop.f32.mrf.mxu0  ;;  %1777 = vmatprep.mubr.msk.bf16.mxu1 %vm2171_vm0, %v2170_v0  ;;  %1762 = vmatpush3.bf16.msra.mxu1 %v1915_v5 }
 0x219   : > { %1763 = vmatprep.subr.bf16.mxu1 %v2170_v0 }
 0x21a   : > { %v1720_v61 = vpop.f32.mrf.mxu0 }
 0x21c   : > { %1764 = vmatpush3.bf16.msra.mxu1 %v1916_v6 }
 0x21d   : > { %1765 = vmatprep.subr.bf16.mxu1 %v2170_v0 }
 0x220   : > { %1766 = vmatpush3.bf16.msra.mxu1 %v1917_v7 }
 0x221   : > { %1767 = vmatprep.subr.bf16.mxu1 %v2170_v0 }
 0x224   : > { %1768 = vmatpush3.bf16.msra.mxu1 %v1918_v8 }
 0x225   : > { %1769 = vmatprep.subr.bf16.mxu1 %v2170_v0 }
 0x228   : > { %1770 = vmatpush3.bf16.msra.mxu1 %v1919_v9 }
 0x229   : > { %1771 = vmatprep.subr.bf16.mxu1 %v2170_v0 }
 0x22c   : > { %1772 = vmatpush3.bf16.msra.mxu1 %v1920_v10 }
 0x22d   : > { %1773 = vmatprep.subr.bf16.mxu1 %v2170_v0 }
 0x230   : > { %1774 = vmatpush3.bf16.msra.mxu1 %v1921_v34 }
 0x231   : > { %1775 = vmatprep.subr.bf16.mxu1 %v2170_v0 }
 0x234   : > { %1776 = vmatpush3.bf16.msra.mxu1 %v1922_v35 }
 0x2d7   : > { %v1066_v12 = vpop.f32.mrf.mxu1 }
 0x2d8   : > { %v1067_v13 = vadd.f32 %v1594_v11, %v1066_v12 }
 0x2d9   : > { %v1739_v14 = vpop.f32.mrf.mxu1 }
 0x2da   : > { %v1072_v15 = vmax.f32 %v1067_v13, 0.0 }
 0x2db   : > { %v1069_v16 = vpop.f32.mrf.mxu1 }
 0x2dc   : > { %v1073_v17 = vmul.f32 %v1072_v15, %v2447_v46 }
 0x2dd   : > { %v1740_v18 = vpop.f32.mrf.mxu1 }
 0x2de   : > { %v1084_v19 = vrot.slane %v1073_v17, 4 }
 0x2e0   : > { %v1085_v21 = vadd.f32 %v1084_v19, %v1073_v17 }
 0x2e2   : > { %v1086_v23 = vrot.slane %v1085_v21, 2 }
 0x2e4   : > { %v1087_v24 = vadd.f32 %v1086_v23, %v1085_v21 }
 0x2e6   : > { %v1088_v26 = vrot.slane %v1087_v24, 1 }
 0x2e8   : > { %v1089_v29 = vadd.f32 %v1088_v26, %v1087_v24 }
 0x2ea   : > { %v1096_v31 = vmul.f32 %v1094_v28, %v1089_v29 }
 0x2ec   : > { %v1097_v32 = vmul.f32 %v1096_v31, %v790_v30 }
 0x2ee   : > { %v1098_v33 = vpack.c.bf16 %v1097_v32, %v1097_v32 }
 0x2f0   : > { %1758 = vmatmul.mubr.bf16.vlgmr.msra.gmra.mxu0 %v1098_v33 }
 0x3b0   : > { %v1204_v37 = vpop.f32.mrf.mxu0 }
 0x3b1   : > { %v1205_v38 = vadd.f32 %v1603_v36, %v1204_v37 }
 0x3b2   : > { %v1759_v39 = vpop.f32.mrf.mxu0 }
 0x3b3   : > { %v1210_v40 = vmax.f32 %v1205_v38, 0.0 }
 0x3b4   : > { %v1207_v0 = vpop.f32.mrf.mxu0 }
 0x3b5   : > { %v1211_v41 = vmul.f32 %v1210_v40, %v2481_v27 }
 0x3b6   : > { %v1760_v42 = vpop.f32.mrf.mxu0 }
 0x3b7   : > { %v1213_v43 = vpack.c.bf16 %v1211_v41, %v1211_v41  ;;  %1212 = vst [vmem:[%s641_s18] sm:$0xff] %v1211_v41 }
 0x3b9   : > { %1778 = vmatmul.mubr.bf16.vlgmr.msra.gmra.mxu1 %v1213_v43 }
 0x3ba   : > { %2072 = shalt.err (!%p2069_p0)
}
 0x3bb   : > { %s2073_s7 = scalar_lea.hbm %s1350_s20, 128  ;;  %s2077_s30 = scalar_lea.hbm %s2570_s15, 256 }
 0x3bc   : > { %p2074_p3 = scmp.ne.s32.totalorder %s1350_s20, %s2073_s7  ;;  %p2078_p12 = scmp.lt.s32.totalorder %s1350_s20, %s2570_s15 }
 0x3bd   : > { %p2079_p10 = scmp.lt.s32.totalorder %s2077_s30, %s2073_s7 }
 0x3be   : > { %p2075_p1 = pnand %p2074_p3, %p2298_p5 }
 0x3bf   : > { %p2080_p4 = por %p2079_p10, %p2078_p12 }
 0x3c0   : > { %p2076_p2 = pneg %p2075_p1 }
 0x3c2   : > { %p2081_p9 = pnand %p2080_p4, %p2076_p2 }
 0x3c4   : > { %2084 = shalt.err (!%p2081_p9)
}
 0x3c5   : > { %1801 = dma.vmem_to_hbm [thread:$0]  (%p2298_p5), %s1353_s29, 128, %s1350_s20, %s1334_s28   ;;  %v1612_v44 = vld [vmem:[%s2569_s14] ss:$0 sm:$0xff] }
 0x3c6   : > { %s2604_s27 = sshll.u32 %s2489_s16, 3  ;;  %s2605_s29 = sshll.u32 %s2281_s25, 7 }
 0x3c7   : > { %s648_s26 = scalar_lea.vmem [#allocation12], %s2604_s27  ;;  %s2606_s24 = sld [smem:[#allocation27_spill]] }
 0x3c8   : > { %s1365_s20 = sshll.u32 %s648_s26, 4  ;;  %s1339_s19 = scalar_lea.sflag [#allocation13], %s2489_s16  ;;  %s1366_s20 = int_to_ptr.vmem [resolvable:$true] %s1365_s20 }
 0x3c9   : > { %s2085_s30 = scalar_lea.vmem %s1366_s20, 128  ;;  %s2174_s17 = smov [#allocation12]  }
 0x3ca   : > { %p2086_p8 = scmp.ne.s32.totalorder %s1366_s20, %s2085_s30  ;;  %s2089_s23 = sshll.u32 %s2174_s17, 4  ;;  %s2090_s23 = int_to_ptr.vmem [resolvable:$false] %s2089_s23 }
 0x3cb   : > { %s2091_s27 = scalar_lea.vmem %s2090_s23, 256  ;;  %p2092_p13 = scmp.lt.s32.totalorder %s1366_s20, %s2090_s23 }
 0x3cc   : > { %p2087_p7 = pnand %p2086_p8, %p2298_p5  ;;  %p2093_p0 = scmp.lt.s32.totalorder %s2091_s27, %s2085_s30 }
 0x3cd   : > { %s2607_s7 = smov %s2606_s24  ;;  %s1363_s18 = scalar_lea.hbm %s2606_s24, %s2605_s29 }
 0x3ce   : > { %p2088_p11 = pneg %p2087_p7  ;;  %p2094_p3 = por %p2093_p0, %p2092_p13 }
 0x3d0   : > { %p2095_p1 = pnand %p2094_p3, %p2088_p11 }
 0x479   : > { %v1319_v45 = vpop.f32.mrf.mxu1 }
 0x47a   : > { %v1320_v46 = vadd.f32 %v1612_v44, %v1319_v45 }
 0x47b   : > { %v1779_v47 = vpop.f32.mrf.mxu1 }
 0x47c   : > { %v1621_v48 = vmul.f32 -1.442695, %v1320_v46 }
 0x47d   : > { %v1322_v49 = vpop.f32.mrf.mxu1 }
 0x47e   : > { %1925 = vpow2.f32 %v1621_v48 }
 0x47f   : > { %v1780_v50 = vpop.f32.mrf.mxu1 }
 0x48b   : > { %v1926_v51 = vpop.eup %1925 }
 0x48c   : > { %v1328_v52 = vadd.f32 1.0, %v1926_v51 }
 0x48e   : > { %1927 = vrcp.f32 %v1328_v52 }
 0x49b   : > { %v1928_v53 = vpop.eup %1927 }
 0x49c   : > { %v1331_v54 = vmul.f32 %v1928_v53, %v2481_v27 }
 0x49e   : > { %1332 = vst [vmem:[%s648_s26] sm:$0xff] %v1331_v54 }
 0x49f   : > { %2098 = shalt.err (!%p2095_p1)
}
 0x4a0   : > { %s2099_s25 = scalar_lea.hbm %s1363_s18, 128  ;;  %s2103_s29 = scalar_lea.hbm %s2607_s7, 256 }
 0x4a1   : > { %p2100_p2 = scmp.ne.s32.totalorder %s1363_s18, %s2099_s25  ;;  %p2104_p4 = scmp.lt.s32.totalorder %s1363_s18, %s2607_s7 }
 0x4a2   : > { %p2105_p9 = scmp.lt.s32.totalorder %s2103_s29, %s2099_s25 }
 0x4a3   : > { %p2101_p12 = pnand %p2100_p2, %p2298_p5 }
 0x4a4   : > { %p2106_p8 = por %p2105_p9, %p2104_p4 }
 0x4a5   : > { %p2102_p10 = pneg %p2101_p12 }
 0x4a7   : > { %p2107_p7 = pnand %p2106_p8, %p2102_p10 }
 0x4a9   : > { %2110 = shalt.err (!%p2107_p7)
}
 0x4aa   : > { %1802 = dma.vmem_to_hbm [thread:$0]  (%p2298_p5), %s1366_s20, 128, %s1363_s18, %s1339_s19  }
 0x4ab PF: > { %s2608_s24 = sld [smem:[#allocation21_spill]] }
 0x4ac   : > { %s2609_s30 = sld [smem:[#allocation19_spill]] }
 0x4b1   : > { %p1838_p11 = scmp.ge.s32.totalorder %s2608_s24, 2 }
 0x4b2   : > { %s1377_s23 = sand.u32 1, %s2609_s30  }
 0x4b3   : > { %p1822_p13 = pnand %p1838_p11, %p2302_p6  ;;  %s1378_s27 = scalar_lea.sflag [#allocation4], %s1377_s23 }
 0x4b5   : > { %p1823_p0 = pneg %p1822_p13 }
 0x4b7   : > { %2140 = dma.done.wait (%p1823_p0), %s1378_s27, 128  }
 0x4b8   : > { %2142 = vsyncadd (%p1823_p0), %s1378_s27, 4294967168  ;;  %s1387_s16 = scalar_lea.sflag [#allocation13], %s1377_s23 }
 0x4b9   : > { %2144 = dma.done.wait (%p1823_p0), %s1387_s16, 128  }
 0x4ba   : > { %2146 = vsyncadd (%p1823_p0), %s1387_s16, 4294967168  ;;  %s2611_s24 = sld [smem:[#allocation22_spill]]  ;;  %s2614_s21 = smov %s2153_s22 }
 0x4bb   : > { %s2612_s25 = sld [smem:[#allocation20_spill]] }
 0x4bc   : > { %s2613_s23 = sld [smem:[#allocation23_spill]] }
 0x4c0   : > { %p33_p5 = scmp.ge.s32.totalorder %s2611_s24, 4  }
 0x4c1   : > { %s2615_s22 = smov %s2612_s25 }
 0x4c2   :  { %35 = sbr.rel (!%p33_p5) target bundleno = 12 (0xc), region = 165 }
 0x4c7   :  { %1392 = vsyncpa [#allocation3], 1 }
 0x4c8   :  { %1394 = vsyncpa [#allocation3 + $0x1], 1 }
 0x4c9   :  { %1395 = vsyncpa [#allocation6], 1 }
 0x4ca   :  { %1396 = vsyncpa [#allocation9], 1 }
 0x4cb   :  { %1397 = vsyncpa [#allocation4], 1 }
 0x4cc   :  { %1399 = vsyncpa [#allocation4 + $0x1], 1 }
 0x4cd   :  { %1400 = vsyncpa [#allocation13], 1 }
 0x4ce   :  { %1402 = vsyncpa [#allocation13 + $0x1], 1 }

</bundles_post_ra>
